<compile_context>
chip_gen: v7x
topology: tpu7x:2x2x1
jax: 0.10.0
libtpu: 0.0.40
codegen_flags: <defaults>
</compile_context>

<pallas_src>
import functools

import jax
import jax.numpy as jnp
from jax import lax
from jax.experimental import pallas as pl
from jax.experimental.pallas import tpu as pltpu

EPS = 1e-6


def _geometric_affine_kernel(x_ref, alpha_ref, beta_ref, o_ref, *, n_valid, n_padded):
    # x_ref:     (1, TC, Np)  one (batch, channel-tile) block
    # alpha_ref: (1, TC, 1)   resident broadcast params
    # beta_ref:  (1, TC, 1)
    x = x_ref[...].astype(jnp.float32)

    # Mask out lane padding (static branch: only emitted when N was padded).
    if n_valid != n_padded:
        lane = lax.broadcasted_iota(jnp.int32, x.shape, dimension=2)
        xm = jnp.where(lane < n_valid, x, 0.0)
    else:
        xm = x

    # Single-pass statistics over the valid lanes.
    inv_n = jnp.float32(1.0 / n_valid)
    s1 = jnp.sum(xm, axis=-1, keepdims=True)            # (1, TC, 1)
    s2 = jnp.sum(xm * xm, axis=-1, keepdims=True)       # (1, TC, 1)
    mu = s1 * inv_n
    var = jnp.maximum(s2 * inv_n - mu * mu, 0.0)         # biased (unbiased=False)
    sigma = jnp.sqrt(var + EPS)

    # Per-channel fused scale/shift: out = x * scale + shift.
    # Note: eps appears twice (inside sqrt and in the denominator), matching
    # the PyTorch module exactly.
    inv = 1.0 / (sigma + EPS)                            # only TC reciprocals
    scale = alpha_ref[...].astype(jnp.float32) * inv     # (1, TC, 1)
    shift = beta_ref[...].astype(jnp.float32) - mu * scale

    o_ref[...] = (x * scale + shift).astype(o_ref.dtype)


def _round_up(v, m):
    return -(-v // m) * m


def geometric_affine(x, alpha, beta, *, target_block_bytes=2 << 20):
    """x: (B, C, N), alpha/beta: (1, C, 1). Returns (B, C, N) in x.dtype."""
    B, C, N = x.shape
    assert alpha.shape == (1, C, 1) and beta.shape == (1, C, 1)

    sublane = 16 if x.dtype == jnp.bfloat16 else 8

    # Lane-dense / sublane-aligned padded extents.
    n_pad = _round_up(N, 128)
    c8 = _round_up(C, sublane)

    # Channel tile: multiple of the sublane count, sized so one f32 block is
    # ~target_block_bytes (double-buffered in + out stays well under VMEM
    # limits on every generation, including v7x's 64 MiB).
    rows_budget = max(sublane, (target_block_bytes // (n_pad * 4)) // sublane * sublane)
    tc = min(c8, rows_budget)
    c_pad = _round_up(c8, tc)

    needs_pad = (c_pad, n_pad) != (C, N)
    if needs_pad:
        x = jnp.pad(x, ((0, 0), (0, c_pad - C), (0, n_pad - N)))
        alpha = jnp.pad(alpha, ((0, 0), (0, c_pad - C), (0, 0)))
        beta = jnp.pad(beta, ((0, 0), (0, c_pad - C), (0, 0)))

    kernel = functools.partial(_geometric_affine_kernel, n_valid=N, n_padded=n_pad)

    grid_spec = pltpu.PrefetchScalarGridSpec(
        num_scalar_prefetch=0,
        grid=(B, c_pad // tc),
        in_specs=[
            pl.BlockSpec((1, tc, n_pad), lambda b, c: (b, c, 0)),   # x block
            pl.BlockSpec((1, tc, 1), lambda b, c: (0, c, 0)),       # alpha
            pl.BlockSpec((1, tc, 1), lambda b, c: (0, c, 0)),       # beta
        ],
        out_specs=pl.BlockSpec((1, tc, n_pad), lambda b, c: (b, c, 0)),
    )

    out = pl.pallas_call(
        kernel,
        out_shape=jax.ShapeDtypeStruct((B, c_pad, n_pad), x.dtype),
        grid_spec=grid_spec,
        compiler_params=pltpu.CompilerParams(
            dimension_semantics=("parallel", "parallel"),
        ),
    )(x, alpha, beta)

    if needs_pad:
        out = out[:, :C, :N]
    return out


def _reference(x, alpha, beta):
    mu = jnp.mean(x, axis=-1, keepdims=True)
    var = jnp.mean((x - mu) ** 2, axis=-1, keepdims=True)   # unbiased=False
    sigma = jnp.sqrt(var + EPS)
    normalized = (x - mu) / (sigma + EPS)
    return alpha * normalized + beta


if __name__ == "__main__":
    key = jax.random.PRNGKey(0)

    B, C, N = 2, 4, 16  # batch, in_channels, num points

    x = jax.random.normal(key, (B, C, N), dtype=jnp.float32)
    # Deterministic parameter init, matching nn.Parameter(torch.ones / torch.zeros)
    alpha = jnp.ones((1, C, 1), dtype=jnp.float32)
    beta = jnp.zeros((1, C, 1), dtype=jnp.float32)

    out = geometric_affine(x, alpha, beta)
    out = jax.block_until_ready(out)

    ref = _reference(x, alpha, beta)
    assert out.shape == (B, C, N)
    assert out.dtype == x.dtype
    assert jnp.allclose(out, ref, atol=1e-5, rtol=1e-5), "mismatch vs reference"

    print("KERNEL_OK")
</pallas_src>

<mosaic_0001>
module attributes {stable_mosaic.version = 11 : i64} {
  func.func @_geometric_affine_kernel(%arg0: i32, %arg1: i32, %arg2: memref<1x8x128xf32, #tpu.memory_space<vmem>>, %arg3: memref<1x8x1xf32, #tpu.memory_space<vmem>>, %arg4: memref<1x8x1xf32, #tpu.memory_space<vmem>>, %arg5: memref<1x8x128xf32, #tpu.memory_space<vmem>>) attributes {dimension_semantics = [#tpu.dimension_semantics<parallel>, #tpu.dimension_semantics<parallel>], iteration_bounds = array<i64: 2, 1>, scalar_prefetch = 0 : i64, scratch_operands = 0 : i64, tpu.core_type = #tpu.core_type<tc>, window_params = [{transform_indices = @transform_0, window_bounds = array<i64: 1, 8, 128>}, {transform_indices = @transform_1, window_bounds = array<i64: 1, 8, 1>}, {transform_indices = @transform_2, window_bounds = array<i64: 1, 8, 1>}, {transform_indices = @transform_3, window_bounds = array<i64: 1, 8, 128>}]} {
    %c0 = arith.constant 0 : index
    %c0_0 = arith.constant 0 : index
    %c0_1 = arith.constant 0 : index
    %0 = vector.load %arg2[%c0, %c0_0, %c0_1] : memref<1x8x128xf32, #tpu.memory_space<vmem>>, vector<1x8x128xf32>
    %1 = tpu.iota {dimensions = array<i32: 2>} : vector<1x8x128xi32>
    %c16_i32 = arith.constant 16 : i32
    %2 = vector.broadcast %c16_i32 : i32 to vector<1x8x128xi32>
    %3 = arith.cmpi slt, %1, %2 : vector<1x8x128xi32>
    %cst = arith.constant 0.000000e+00 : f32
    %4 = vector.broadcast %cst : f32 to vector<1x8x128xf32>
    %5 = arith.select %3, %0, %4 : vector<1x8x128xi1>, vector<1x8x128xf32>
    %cst_2 = arith.constant dense<0.000000e+00> : vector<1x8xf32>
    %6 = vector.multi_reduction <add>, %5, %cst_2 [2] : vector<1x8x128xf32> to vector<1x8xf32>
    %7 = vector.shape_cast %6 : vector<1x8xf32> to vector<1x8x1xf32>
    %8 = arith.mulf %5, %5 : vector<1x8x128xf32>
    %cst_3 = arith.constant dense<0.000000e+00> : vector<1x8xf32>
    %9 = vector.multi_reduction <add>, %8, %cst_3 [2] : vector<1x8x128xf32> to vector<1x8xf32>
    %10 = vector.shape_cast %9 : vector<1x8xf32> to vector<1x8x1xf32>
    %cst_4 = arith.constant 6.250000e-02 : f32
    %11 = vector.broadcast %cst_4 : f32 to vector<1x8x1xf32>
    %12 = arith.mulf %7, %11 : vector<1x8x1xf32>
    %cst_5 = arith.constant 6.250000e-02 : f32
    %13 = vector.broadcast %cst_5 : f32 to vector<1x8x1xf32>
    %14 = arith.mulf %10, %13 : vector<1x8x1xf32>
    %15 = arith.mulf %12, %12 : vector<1x8x1xf32>
    %16 = arith.subf %14, %15 : vector<1x8x1xf32>
    %cst_6 = arith.constant 0.000000e+00 : f32
    %17 = vector.broadcast %cst_6 : f32 to vector<1x8x1xf32>
    %18 = arith.maximumf %16, %17 : vector<1x8x1xf32>
    %cst_7 = arith.constant 9.99999997E-7 : f32
    %19 = vector.broadcast %cst_7 : f32 to vector<1x8x1xf32>
    %20 = arith.addf %18, %19 : vector<1x8x1xf32>
    %21 = math.sqrt %20 : vector<1x8x1xf32>
    %cst_8 = arith.constant 9.99999997E-7 : f32
    %22 = vector.broadcast %cst_8 : f32 to vector<1x8x1xf32>
    %23 = arith.addf %21, %22 : vector<1x8x1xf32>
    %cst_9 = arith.constant 1.000000e+00 : f32
    %24 = vector.broadcast %cst_9 : f32 to vector<1x8x1xf32>
    %25 = arith.divf %24, %23 : vector<1x8x1xf32>
    %c0_10 = arith.constant 0 : index
    %c0_11 = arith.constant 0 : index
    %c0_12 = arith.constant 0 : index
    %26 = vector.load %arg3[%c0_10, %c0_11, %c0_12] : memref<1x8x1xf32, #tpu.memory_space<vmem>>, vector<1x8x1xf32>
    %27 = arith.mulf %26, %25 : vector<1x8x1xf32>
    %c0_13 = arith.constant 0 : index
    %c0_14 = arith.constant 0 : index
    %c0_15 = arith.constant 0 : index
    %28 = vector.load %arg4[%c0_13, %c0_14, %c0_15] : memref<1x8x1xf32, #tpu.memory_space<vmem>>, vector<1x8x1xf32>
    %29 = arith.mulf %12, %27 : vector<1x8x1xf32>
    %30 = arith.subf %28, %29 : vector<1x8x1xf32>
    %31 = vector.broadcast %27 : vector<1x8x1xf32> to vector<1x8x128xf32>
    %32 = arith.mulf %0, %31 : vector<1x8x128xf32>
    %33 = vector.broadcast %30 : vector<1x8x1xf32> to vector<1x8x128xf32>
    %34 = arith.addf %32, %33 : vector<1x8x128xf32>
    %c0_16 = arith.constant 0 : index
    %c0_17 = arith.constant 0 : index
    %c0_18 = arith.constant 0 : index
    %35 = vector.load %arg5[%c0_16, %c0_17, %c0_18] : memref<1x8x128xf32, #tpu.memory_space<vmem>>, vector<1x8x128xf32>
    tpu.vector_store %arg5[%c0_16, %c0_17, %c0_18], %34 {strides = array<i32>} : memref<1x8x128xf32, #tpu.memory_space<vmem>>, vector<1x8x128xf32>,
    return
  }
  func.func @transform_0(%arg0: i32, %arg1: i32) -> (i32, i32, i32) {
    %c0_i32 = arith.constant 0 : i32
    %c0_i32_0 = arith.constant 0 : i32
    return %arg0, %arg1, %c0_i32 : i32, i32, i32
  }
  func.func @transform_1(%arg0: i32, %arg1: i32) -> (i32, i32, i32) {
    %c0_i32 = arith.constant 0 : i32
    %c0_i32_0 = arith.constant 0 : i32
    %c0_i32_1 = arith.constant 0 : i32
    return %c0_i32, %arg1, %c0_i32_0 : i32, i32, i32
  }
  func.func @transform_2(%arg0: i32, %arg1: i32) -> (i32, i32, i32) {
    %c0_i32 = arith.constant 0 : i32
    %c0_i32_0 = arith.constant 0 : i32
    %c0_i32_1 = arith.constant 0 : i32
    return %c0_i32, %arg1, %c0_i32_0 : i32, i32, i32
  }
  func.func @transform_3(%arg0: i32, %arg1: i32) -> (i32, i32, i32) {
    %c0_i32 = arith.constant 0 : i32
    %c0_i32_0 = arith.constant 0 : i32
    return %arg0, %arg1, %c0_i32 : i32, i32, i32
  }
}

</mosaic_0001>

<bundles_post_ra>
// kernel: tpu_custom_call.1
= control target key start
LH: loop header
LB: loop body
LE: loop exit
PB: predicated region body
PF: predicated region fallthrough
CT: control target
= control target key end

     0   :  { %8 = vsyncpa [#allocation3], 0  ;;  %s680_s0 = inlined_call_operand.vmem [shape: f32[2,8,128], index: 0, kind: input, shape index: {}]   ;;  %s681_s1 = inlined_call_operand.vmem [shape: f32[1,8,1], index: 1, kind: input, shape index: {}]   ;;  %s682_s2 = inlined_call_operand.vmem [shape: f32[1,8,1], index: 2, kind: input, shape index: {}]   ;;  %s683_s3 = inlined_call_operand.hbm [shape: f32[2,8,128], index: 3, kind: output, shape index: {}]  }
   0x1   :  { %10 = vsyncpa [#allocation3 + $0x1], 0  ;;  %s562_s12 = smov 0   ;;  %s564_s13 = smov 0  }
   0x2   :  { %s566_s14 = smov 0   ;;  %s568_s15 = smov 0  }
   0x3   :  { %s570_s16 = smov 0   ;;  %s572_s17 = smov 0  }
   0x4 LB: > { %s385_s18 = sadd.s32 4294967295, %s538_s17   ;;  %s386_s19 = sadd.s32 4294967294, %s538_s17   ;;  %s538_s17 = sphi %s572_s17, %s16_s17   ;;  %s534_s16 = sphi %s570_s16, %s690_s16   ;;  %s530_s15 = sphi %s568_s15, %s689_s15   ;;  %s526_s14 = sphi %s566_s14, %s688_s14   ;;  %s522_s13 = sphi %s564_s13, %s687_s13   ;;  %s518_s12 = sphi %s562_s12, %s686_s12  }
   0x5   : > { %s28_s20 = sadd.s32 1, %s534_s16  ;;  %s117_s21 = sadd.s32 1, %s526_s14 }
   0x6   : > { %p30_p0 = scmp.ge.s32.totalorder %s28_s20, 2  ;;  %p127_p1 = scmp.ne.s32.totalorder %s526_s14, %s522_s13 }
   0x7   : > { %p128_p2 = scmp.eq.s32.totalorder %s385_s18, 1  ;;  %p133_p3 = scmp.ne.s32.totalorder %s522_s13, %s518_s12 }
   0x8   : > { %s692_s20 = smov (%p30_p0, %s28_s20), 0  ;;  %p134_p5 = scmp.eq.s32.totalorder %s386_s19, 1 }
   0x9   : > { %p602_p4 = por %p128_p2, %p127_p1  ;;  %s112_s23 = ssub.s32 %s534_s16, %s692_s20 }
   0xa   : > { %p391_p6 = scmp.ge.s32.totalorder %s538_s17, 1  ;;  %p115_p7 = scmp.eq.s32.totalorder %s112_s23, 0 }
   0xb   : > { %p609_p8 = por %p134_p5, %p133_p3  ;;  %p176_p9 = scmp.lt.s32.totalorder %s538_s17, 3 }
   0xc   : > { %s615_s25 = scalar_select %p115_p7, %s526_s14, %s117_s21  }
   0xd   : > { %p177_p10 = pnand %p391_p6, %p176_p9 }
   0xe   : > { %p210_p11 = scmp.lt.s32.totalorder (!%p177_p10), %s530_s15, 1  ;;  %v226_v0 = vlaneseq (!%p177_p10)  ;;  %v540_v5 = vmov (!%p177_p10), 0   ;;  %v251_v20 = vld [vmem:[%s681_s1] sm:$0xff] (!%p177_p10)  ;;  %s207_s8 = sand.u32 (!%p177_p10), 1, %s522_s13  }
   0xf   : > { %180 = sbr.rel (%p177_p10) target bundleno = 360 (0x168), region = 32  ;;  %454 = vset.pattern.permute.xlu1 (!%p177_p10), %v540_v5  ;;  %455 = vset.pattern.permute.xlu0 (!%p177_p10), %v540_v5  ;;  %v253_v23 = vld [vmem:[%s682_s2] sm:$0xff] (!%p177_p10)  ;;  %s392_s9 = sshll.u32 (!%p177_p10), %s207_s8, 3 }
  0x10   : > { %v227_v1 = vand.u32 (!%p177_p10), 127, %v226_v0  ;;  %s395_s10 = sshll.u32 (!%p177_p10), %s530_s15, 7  ;;  %s209_s11 = scalar_lea.vmem (!%p177_p10), [#allocation2], %s392_s9 }
  0x11   : > { %s284_s18 = sshll.u32 (!%p177_p10), %s209_s11, 4  ;;  %s633_s23 = scalar_lea.hbm (!%p177_p10), %s683_s3, %s395_s10  ;;  %s635_s18 = int_to_ptr.vmem [resolvable:$true] %s284_s18 }
  0x12   : > { %vm228_vm0 = vcmp.lt.s32.totalorder (!%p177_p10), %v227_v1, 16 }
  0x16   : > { %s211_s26 = scalar_select %p210_p11, %s530_s15, 1 }
  0x17   : > { %s541_s15 = smov [#allocation2]  }
  0x18   : > { %s393_s27 = sshll.u32 %s211_s26, 3  ;;  %s270_s26 = scalar_lea.sflag [#allocation3], %s207_s8 }
  0x19   : > { %s216_s30 = scalar_lea.vmem %s680_s0, %s393_s27  ;;  %s460_s27 = scalar_lea.vmem %s635_s18, 128 }
  0x1a   : > { %v225_v2 = vld [vmem:[%s216_s30] sm:$0xff]  ;;  %p461_p12 = scmp.ne.s32.totalorder %s635_s18, %s460_s27  ;;  %s464_s28 = sshll.u32 %s541_s15, 4  ;;  %s465_s28 = int_to_ptr.vmem [resolvable:$false] %s464_s28 }
  0x1b   : > { %v229_v3 = vsel %vm228_vm0, %v225_v2, 0.0  ;;  %s466_s29 = scalar_lea.vmem %s465_s28, 256  ;;  %p467_p1 = scmp.lt.s32.totalorder %s635_s18, %s465_s28 }
  0x1c   : > { %230 = vadd.xlane.f32.xlu0 %v229_v3  ;;  %v232_v4 = vmul.f32 %v229_v3, %v229_v3  ;;  %p462_p13 = pnand %p461_p12, %p602_p4  ;;  %p468_p2 = scmp.lt.s32.totalorder %s466_s29, %s460_s27 }
  0x1e   : > { %p463_p0 = pneg %p462_p13  ;;  %p469_p3 = por %p468_p2, %p467_p1 }
  0x20   : > { %233 = vadd.xlane.f32.xlu0 %v232_v4  ;;  %p470_p5 = pnand %p469_p3, %p463_p0 }
  0xa9   : > { %v231_v6 = vpop.xlane.xlu0 %230 }
  0xaa   : > { %v235_v7 = vmul.f32 0.0625, %v231_v6 }
  0xac   : > { %v237_v9 = vmul.f32 %v235_v7, %v235_v7 }
  0xad   : > { %v234_v8 = vpop.xlane.xlu0 %233 }
  0xae   : > { %v236_v10 = vmul.f32 0.0625, %v234_v8 }
  0xb0   : > { %v238_v11 = vsub.f32 %v236_v10, %v237_v9 }
  0xb2   : > { %v239_v12 = vmax.f32 %v238_v11, 0.0 }
  0xb4   : > { %v240_v13 = vadd.f32 1e-06, %v239_v12 }
  0xb6   : > { %456 = vrsqrt.f32 %v240_v13  ;;  %vm243_vm1 = vcmp.eq.f32.partialorder %v240_v13, inf  ;;  %v246_v16 = vand.u32 2147483648, %v240_v13  ;;  %vm245_vm2 = vcmp.eq.f32.partialorder %v240_v13, 0.0 }
  0xc0   : > { %v457_v14 = vpop.eup %456 }
  0xc1   : > { %v242_v15 = vmul.f32 %v457_v14, %v240_v13 }
  0xc3   : > { %v244_v17 = vsel %vm243_vm1, %v240_v13, %v242_v15 }
  0xc4   : > { %v247_v18 = vsel %vm245_vm2, %v246_v16, %v244_v17 }
  0xc5   : > { %v248_v19 = vadd.f32 1e-06, %v247_v18 }
  0xc7   : > { %458 = vrcp.f32 %v248_v19 }
  0xd1   : > { %v459_v21 = vpop.eup %458 }
  0xd2   : > { %v252_v22 = vmul.f32 %v459_v21, %v251_v20 }
  0xd4   : > { %258 = vperm.xlu1 %454, %v252_v22   ;;  %v254_v24 = vmul.f32 %v252_v22, %v235_v7 }
  0xd6   : > { %v255_v25 = vsub.f32 %v253_v23, %v254_v24 }
  0xd8   : > { %264 = vperm.xlu1 %454, %v255_v25  }
 0x153   : > { %v259_v26 = vpop.permute.xlu1 %258 }
 0x154   : > { %v261_v27 = vmul.f32 %v259_v26, %v225_v2 }
 0x157   : > { %v265_v28 = vpop.permute.xlu1 %264 }
 0x158   : > { %v267_v29 = vadd.f32 %v265_v28, %v261_v27 }
 0x15a   : > { %268 = vst [vmem:[%s209_s11] sm:$0xff] %v267_v29 }
 0x15b   : > { %473 = shalt.err (!%p470_p5)
}
 0x15c   : > { %s474_s30 = scalar_lea.hbm %s633_s23, 128  ;;  %s478_s6 = scalar_lea.hbm %s683_s3, 256 }
 0x15d   : > { %p475_p6 = scmp.ne.s32.totalorder %s633_s23, %s474_s30  ;;  %p479_p10 = scmp.lt.u32.totalorder %s633_s23, %s683_s3 }
 0x15e   : > { %p480_p11 = scmp.lt.u32.totalorder %s478_s6, %s474_s30  ;;  %p482_p13 = scmp.lt.u32.totalorder %s474_s30, %s633_s23 }
 0x15f   : > { %p476_p7 = pnand %p475_p6, %p602_p4 }
 0x160   : > { %p481_p12 = por %p480_p11, %p479_p10 }
 0x161   : > { %p477_p9 = pneg %p476_p7 }
 0x162   : > { %p483_p0 = por %p482_p13, %p481_p12 }
 0x164   : > { %p484_p1 = pnand %p483_p0, %p477_p9 }
 0x166   : > { %487 = shalt.err (!%p484_p1)
}
 0x167   : > { %398 = dma.vmem_to_hbm [thread:$0]  (%p602_p4), %s635_s18, 128, %s633_s23, %s270_s26  }
 0x168 PF: > { %p404_p2 = scmp.ge.s32.totalorder %s538_s17, 2  ;;  %s296_s9 = sand.u32 1, %s518_s12  }
 0x169   : > { %s297_s10 = scalar_lea.sflag [#allocation3], %s296_s9 }
 0x16a   : > { %p401_p3 = pnand %p404_p2, %p609_p8 }
 0x16c   : > { %513 = dma.done.wait (!%p401_p3), %s297_s10, 128  }
 0x16d   : > { %515 = vsyncadd (!%p401_p3), %s297_s10, 4294967168  ;;  %s16_s17 = sadd.s32 1, %s538_s17   ;;  %s686_s12 = smov %s522_s13 }
 0x16e   : > { %p13_p5 = scmp.ge.s32.totalorder %s16_s17, 4   ;;  %s687_s13 = smov %s526_s14 }
 0x16f   : > { %s688_s14 = smov %s615_s25  ;;  %s689_s15 = smov %s534_s16 }
 0x170   : > { %s690_s16 = smov %s692_s20  ;;  %15 = sbr.rel (!%p13_p5) target bundleno = 4 (0x4), region = 73 }
 0x177   :  { %302 = vsyncpa [#allocation3], 1 }
 0x178   :  { %304 = vsyncpa [#allocation3 + $0x1], 1 }

</bundles_post_ra>
